<compile_context>
chip_gen: v7x
topology: tpu7x:2x2x1
jax: 0.10.0
libtpu: 0.0.40
codegen_flags: <defaults>
</compile_context>

<pallas_src>
import math

import jax
import jax.numpy as jnp
from jax.experimental import pallas as pl
from jax.experimental.pallas import tpu as pltpu


def _round_up(x, m):
    return ((x + m - 1) // m) * m


# --------------------------------------------------------------------------
# Pallas kernel (transposed layout: every operand is (features, tokens)).
#   hT = relu(W1soT @ soT + embW1T @ onehotT + b1T)          # (H,  tn)
#   oT = W2T @ hT + b2T                                      # (dm, tn)
# --------------------------------------------------------------------------
def _mlp_kernel(so_ref, ids_ref, w1_ref, we_ref, b1_ref, w2_ref, b2_ref, o_ref):
    so = so_ref[...]                          # (2F, tn)  bf16
    ids = ids_ref[...]                        # (1,  tn)  int32
    nrel = we_ref.shape[1]                    # padded relation count
    tn = so.shape[1]

    # Embedding gather as a one-hot matmul; the embedding table was folded into
    # layer 1 (rel_emb @ W1_emb) in the wrapper.  Out-of-range / negative ids
    # silently yield a zero embedding (nn.Embedding would error) -- ids are
    # assumed valid.
    iota = jax.lax.broadcasted_iota(jnp.int32, (nrel, tn), 0)
    onehot = (iota == ids).astype(jnp.float32)            # (nrel, tn)

    h = jnp.dot(w1_ref[...], so, preferred_element_type=jnp.float32)       # (H, tn)
    h = h + jnp.dot(we_ref[...], onehot, preferred_element_type=jnp.float32)
    h = jnp.maximum(h + b1_ref[...], 0.0)                 # fp32 bias + ReLU

    # Layer 2 in fp32 (weights are tiny); only the final store is bf16.
    o = jnp.dot(w2_ref[...], h, preferred_element_type=jnp.float32) + b2_ref[...]
    o_ref[...] = o.astype(o_ref.dtype)                    # lane-dense bf16 store


def triplet_mlp_pallas(soT, idsT, w1T, embT, b1T, w2T, b2T, *, tn_target=1024):
    """soT: (2F, Np) bf16, idsT: (1, Np) int32, Np a multiple of 128.

    Returns (d_model, Np) bf16 (tokens on the lane axis).
    """
    two_f, n_pad = soT.shape
    hid = w1T.shape[0]
    nrel_pad = embT.shape[1]
    dm = w2T.shape[0]

    # Token tile (lane dim): multiple of 128 so stores are unmasked; capped so
    # the grid has >=2 steps when possible (v7x has 2 TensorCores).
    tn = max(128, min(tn_target, _round_up(-(-n_pad // 2), 128), n_pad))
    grid = (pl.cdiv(n_pad, tn),)

    flops = 2 * n_pad * (two_f * hid + nrel_pad * hid + hid * dm)
    bytes_accessed = (
        soT.size * soT.dtype.itemsize          # packed subject|object features
        + idsT.size * idsT.dtype.itemsize      # relation ids
        + w1T.size * w1T.dtype.itemsize
        + embT.size * embT.dtype.itemsize
        + b1T.size * b1T.dtype.itemsize
        + w2T.size * w2T.dtype.itemsize
        + b2T.size * b2T.dtype.itemsize
        + n_pad * dm * 2                       # bf16 output
    )

    return pl.pallas_call(
        _mlp_kernel,
        out_shape=jax.ShapeDtypeStruct((dm, n_pad), jnp.bfloat16),
        grid_spec=pltpu.PrefetchScalarGridSpec(
            num_scalar_prefetch=0,
            grid=grid,
            in_specs=[
                pl.BlockSpec((two_f, tn), lambda i: (0, i)),      # soT tiles
                pl.BlockSpec((1, tn), lambda i: (0, i)),          # ids tiles
                # Constant-index blocks: Pallas only re-DMAs a block when its
                # block index changes, so the weights are fetched once per call.
                pl.BlockSpec((hid, two_f), lambda i: (0, 0)),     # W1[:2F].T
                pl.BlockSpec((hid, nrel_pad), lambda i: (0, 0)),  # (rel_emb@W1e).T
                pl.BlockSpec((hid, 1), lambda i: (0, 0)),         # b1.T (fp32)
                pl.BlockSpec((dm, hid), lambda i: (0, 0)),        # W2.T (fp32)
                pl.BlockSpec((dm, 1), lambda i: (0, 0)),          # b2.T (fp32)
            ],
            out_specs=pl.BlockSpec((dm, tn), lambda i: (0, i)),   # lane-dense
        ),
        compiler_params=pltpu.CompilerParams(
            dimension_semantics=("parallel",),   # shards token tiles across TCs (v7x)
        ),
        cost_estimate=pl.CostEstimate(
            flops=flops, transcendentals=0, bytes_accessed=bytes_accessed),
    )(soT, idsT, w1T, embT, b1T, w2T, b2T)


# --------------------------------------------------------------------------
# Full TripletEncoder forward (tiny param prep in JAX, hot path in Pallas)
# --------------------------------------------------------------------------
def triplet_encoder_forward(params, subject_features, object_features, relation_ids):
    b, s, f = subject_features.shape
    n = b * s
    two_f = 2 * f

    w1 = params["w1"]                                    # (Fin, H) fp32
    w1_so, w1_emb = w1[:two_f], w1[two_f:]
    # Fold the embedding table into layer 1: emb @ W1_e == one_hot @ (rel_emb @ W1_e)
    emb_w1 = params["rel_emb"] @ w1_emb                  # (num_relations, H) fp32
    nrel = emb_w1.shape[0]
    nrel_pad = _round_up(nrel, 16)                       # dtype-aware pad (bf16-safe)
    if nrel_pad != nrel:
        emb_w1 = jnp.pad(emb_w1, ((0, nrel_pad - nrel), (0, 0)))

    # Pack subject|object side by side and transpose so tokens sit on lanes.
    so = jnp.concatenate(
        [subject_features.reshape(n, f), object_features.reshape(n, f)], axis=-1)
    n_pad = _round_up(n, 128)                            # <=127 zero rows of padding
    soT = jnp.pad(so, ((0, n_pad - n), (0, 0))).astype(jnp.bfloat16).T   # (2F, Np)
    idsT = jnp.pad(relation_ids.reshape(1, n).astype(jnp.int32),
                   ((0, 0), (0, n_pad - n)))             # (1, Np); padded rows sliced off

    outT = triplet_mlp_pallas(
        soT, idsT,
        w1_so.T.astype(jnp.bfloat16),                    # (H, 2F)
        emb_w1.T.astype(jnp.float32),                    # (H, nrel_pad)
        params["b1"].reshape(-1, 1).astype(jnp.float32),  # (H, 1)
        params["w2"].T.astype(jnp.float32),              # (dm, H)
        params["b2"].reshape(-1, 1).astype(jnp.float32),  # (dm, 1)
    )                                                    # (dm, Np) bf16

    # Kernel's HBM stream is bf16; widen to the module's fp32 in the wrapper.
    return outT[:, :n].astype(jnp.float32).T.reshape(b, s, -1)


# --------------------------------------------------------------------------
# References: pure fp32, and one that emulates the kernel's bf16 rounding.
# --------------------------------------------------------------------------
def triplet_encoder_reference(params, subject_features, object_features, relation_ids):
    emb = jnp.take(params["rel_emb"], relation_ids, axis=0)
    x = jnp.concatenate([subject_features, object_features, emb], axis=-1)
    h = jnp.maximum(x @ params["w1"] + params["b1"][0], 0.0)
    return h @ params["w2"] + params["b2"][0]


def triplet_encoder_reference_bf16(params, subject_features, object_features, relation_ids):
    bf = lambda x: x.astype(jnp.bfloat16).astype(jnp.float32)
    f = subject_features.shape[-1]
    w1 = params["w1"]
    w1_so, w1_emb = w1[:2 * f], w1[2 * f:]
    emb_w1 = params["rel_emb"] @ w1_emb
    so = jnp.concatenate([subject_features, object_features], axis=-1)
    hp = jax.lax.Precision.HIGHEST
    h = jnp.einsum("bsf,fh->bsh", bf(so), bf(w1_so), precision=hp)
    h = h + jnp.take(emb_w1, relation_ids, axis=0) + params["b1"][0]
    h = jnp.maximum(h, 0.0)
    out = jnp.einsum("bsh,hd->bsd", h, params["w2"], precision=hp) + params["b2"][0]
    return out.astype(jnp.bfloat16).astype(jnp.float32)


# --------------------------------------------------------------------------
if __name__ == "__main__":
    # Hyper-parameters (mirror the args the module's __init__ reads)
    num_box_features = 4
    relation_embedding_dim = 8
    num_relations = 10
    d_model = 32
    # dnn_dropout -> identity at inference.

    in_features = num_box_features * 2 + relation_embedding_dim                   # 16
    hidden_features = 2 ** math.floor(math.log2((in_features * d_model) ** 0.5))  # 16

    key = jax.random.PRNGKey(0)
    k_sub, k_obj, k_rel, k_emb, k_w1, k_b1, k_w2, k_b2 = jax.random.split(key, 8)

    # Deterministic parameter init (synthetic weights, not a checkpoint).
    params = {
        "rel_emb": jax.random.normal(k_emb, (num_relations, relation_embedding_dim), jnp.float32),
        "w1": jax.random.normal(k_w1, (in_features, hidden_features), jnp.float32)
              * (1.0 / math.sqrt(in_features)),
        "b1": jax.random.normal(k_b1, (1, hidden_features), jnp.float32) * 0.01,
        "w2": jax.random.normal(k_w2, (hidden_features, d_model), jnp.float32)
              * (1.0 / math.sqrt(hidden_features)),
        "b2": jax.random.normal(k_b2, (1, d_model), jnp.float32) * 0.01,
    }

    def check(batch, seq, seed):
        ks, ko, kr = jax.random.split(jax.random.PRNGKey(seed), 3)
        sub = jax.random.normal(ks, (batch, seq, num_box_features), jnp.float32)
        obj = jax.random.normal(ko, (batch, seq, num_box_features), jnp.float32)
        ids = jax.random.randint(kr, (batch, seq), 0, num_relations)

        out = jax.block_until_ready(triplet_encoder_forward(params, sub, obj, ids))
        assert out.shape == (batch, seq, d_model)

        # Tight check vs. a reference that emulates the kernel's bf16 rounding.
        ref_bf16 = triplet_encoder_reference_bf16(params, sub, obj, ids)
        assert jnp.allclose(out, ref_bf16, atol=3e-2, rtol=3e-2), \
            "mismatch vs bf16-emulating reference"
        # Loose sanity check vs. the pure fp32 reference.
        ref = triplet_encoder_reference(params, sub, obj, ids)
        assert jnp.allclose(out, ref, atol=1e-1, rtol=1e-1), \
            "mismatch vs pure-JAX fp32 reference"

    # Small shapes consistent with the module (single tile)...
    check(batch=2, seq=8, seed=1)
    # ...and a multi-tile grid with a ragged, masked last tile (n=300 -> Np=384).
    check(batch=3, seq=100, seed=2)

    print("KERNEL_OK")
</pallas_src>

<mosaic_0001>
module attributes {stable_mosaic.version = 11 : i64} {
  func.func @_mlp_kernel(%arg0: i32, %arg1: memref<8x128xbf16, #tpu.memory_space<vmem>>, %arg2: memref<1x128xi32, #tpu.memory_space<vmem>>, %arg3: memref<16x8xbf16, #tpu.memory_space<vmem>>, %arg4: memref<16x16xf32, #tpu.memory_space<vmem>>, %arg5: memref<16x1xf32, #tpu.memory_space<vmem>>, %arg6: memref<32x16xf32, #tpu.memory_space<vmem>>, %arg7: memref<32x1xf32, #tpu.memory_space<vmem>>, %arg8: memref<32x128xbf16, #tpu.memory_space<vmem>>) attributes {dimension_semantics = [#tpu.dimension_semantics<parallel>], iteration_bounds = array<i64: 1>, scalar_prefetch = 0 : i64, scratch_operands = 0 : i64, tpu.core_type = #tpu.core_type<tc>, window_params = [{transform_indices = @transform_0, window_bounds = array<i64: 8, 128>}, {transform_indices = @transform_1, window_bounds = array<i64: 1, 128>}, {pipeline_mode = #tpu.pipeline_mode<synchronous>, transform_indices = @transform_2, window_bounds = array<i64: 16, 8>}, {pipeline_mode = #tpu.pipeline_mode<synchronous>, transform_indices = @transform_3, window_bounds = array<i64: 16, 16>}, {pipeline_mode = #tpu.pipeline_mode<synchronous>, transform_indices = @transform_4, window_bounds = array<i64: 16, 1>}, {pipeline_mode = #tpu.pipeline_mode<synchronous>, transform_indices = @transform_5, window_bounds = array<i64: 32, 16>}, {pipeline_mode = #tpu.pipeline_mode<synchronous>, transform_indices = @transform_6, window_bounds = array<i64: 32, 1>}, {transform_indices = @transform_7, window_bounds = array<i64: 32, 128>}]} {
    %c0 = arith.constant 0 : index
    %c0_0 = arith.constant 0 : index
    %0 = vector.load %arg1[%c0, %c0_0] : memref<8x128xbf16, #tpu.memory_space<vmem>>, vector<8x128xbf16>
    %c0_1 = arith.constant 0 : index
    %c0_2 = arith.constant 0 : index
    %1 = vector.load %arg2[%c0_1, %c0_2] : memref<1x128xi32, #tpu.memory_space<vmem>>, vector<1x128xi32>
    %2 = tpu.iota {dimensions = array<i32: 0>} : vector<16x128xi32>
    %3 = vector.broadcast %1 : vector<1x128xi32> to vector<16x128xi32>
    %4 = arith.cmpi eq, %2, %3 : vector<16x128xi32>
    %5 = arith.extui %4 : vector<16x128xi1> to vector<16x128xi32>
    %6 = arith.sitofp %5 : vector<16x128xi32> to vector<16x128xf32>
    %c0_3 = arith.constant 0 : index
    %c0_4 = arith.constant 0 : index
    %7 = vector.load %arg3[%c0_3, %c0_4] : memref<16x8xbf16, #tpu.memory_space<vmem>>, vector<16x8xbf16>
    %cst = arith.constant dense<0.000000e+00> : vector<16x128xf32>
    %8 = tpu.matmul %7, %0, %cst {dimension_numbers = #tpu.dot_dimension_numbers<[1], [0], [0], [1], [0, 0, 1, 1], [], []>} : vector<16x8xbf16>, vector<8x128xbf16>, vector<16x128xf32> -> vector<16x128xf32>
    %c0_5 = arith.constant 0 : index
    %c0_6 = arith.constant 0 : index
    %9 = vector.load %arg4[%c0_5, %c0_6] : memref<16x16xf32, #tpu.memory_space<vmem>>, vector<16x16xf32>
    %cst_7 = arith.constant dense<0.000000e+00> : vector<16x128xf32>
    %10 = tpu.matmul %9, %6, %cst_7 {dimension_numbers = #tpu.dot_dimension_numbers<[1], [0], [0], [1], [0, 0, 1, 1], [], []>} : vector<16x16xf32>, vector<16x128xf32>, vector<16x128xf32> -> vector<16x128xf32>
    %11 = arith.addf %8, %10 : vector<16x128xf32>
    %c0_8 = arith.constant 0 : index
    %c0_9 = arith.constant 0 : index
    %12 = vector.load %arg5[%c0_8, %c0_9] : memref<16x1xf32, #tpu.memory_space<vmem>>, vector<16x1xf32>
    %13 = vector.broadcast %12 : vector<16x1xf32> to vector<16x128xf32>
    %14 = arith.addf %11, %13 : vector<16x128xf32>
    %cst_10 = arith.constant 0.000000e+00 : f32
    %15 = vector.broadcast %cst_10 : f32 to vector<16x128xf32>
    %16 = arith.maximumf %14, %15 : vector<16x128xf32>
    %c0_11 = arith.constant 0 : index
    %c0_12 = arith.constant 0 : index
    %17 = vector.load %arg6[%c0_11, %c0_12] : memref<32x16xf32, #tpu.memory_space<vmem>>, vector<32x16xf32>
    %cst_13 = arith.constant dense<0.000000e+00> : vector<32x128xf32>
    %18 = tpu.matmul %17, %16, %cst_13 {dimension_numbers = #tpu.dot_dimension_numbers<[1], [0], [0], [1], [0, 0, 1, 1], [], []>} : vector<32x16xf32>, vector<16x128xf32>, vector<32x128xf32> -> vector<32x128xf32>
    %c0_14 = arith.constant 0 : index
    %c0_15 = arith.constant 0 : index
    %19 = vector.load %arg7[%c0_14, %c0_15] : memref<32x1xf32, #tpu.memory_space<vmem>>, vector<32x1xf32>
    %20 = vector.broadcast %19 : vector<32x1xf32> to vector<32x128xf32>
    %21 = arith.addf %18, %20 : vector<32x128xf32>
    %22 = arith.truncf %21 : vector<32x128xf32> to vector<32x128xbf16>
    %c0_16 = arith.constant 0 : index
    %c0_17 = arith.constant 0 : index
    %23 = vector.load %arg8[%c0_16, %c0_17] : memref<32x128xbf16, #tpu.memory_space<vmem>>, vector<32x128xbf16>
    tpu.vector_store %arg8[%c0_16, %c0_17], %22 {strides = array<i32>} : memref<32x128xbf16, #tpu.memory_space<vmem>>, vector<32x128xbf16>,
    return
  }
  func.func @transform_0(%arg0: i32) -> (i32, i32) {
    %c0_i32 = arith.constant 0 : i32
    %c0_i32_0 = arith.constant 0 : i32
    return %c0_i32, %arg0 : i32, i32
  }
  func.func @transform_1(%arg0: i32) -> (i32, i32) {
    %c0_i32 = arith.constant 0 : i32
    %c0_i32_0 = arith.constant 0 : i32
    return %c0_i32, %arg0 : i32, i32
  }
  func.func @transform_2(%arg0: i32) -> (i32, i32) {
    %c0_i32 = arith.constant 0 : i32
    %c0_i32_0 = arith.constant 0 : i32
    %c0_i32_1 = arith.constant 0 : i32
    return %c0_i32, %c0_i32_0 : i32, i32
  }
  func.func @transform_3(%arg0: i32) -> (i32, i32) {
    %c0_i32 = arith.constant 0 : i32
    %c0_i32_0 = arith.constant 0 : i32
    %c0_i32_1 = arith.constant 0 : i32
    return %c0_i32, %c0_i32_0 : i32, i32
  }
  func.func @transform_4(%arg0: i32) -> (i32, i32) {
    %c0_i32 = arith.constant 0 : i32
    %c0_i32_0 = arith.constant 0 : i32
    %c0_i32_1 = arith.constant 0 : i32
    return %c0_i32, %c0_i32_0 : i32, i32
  }
  func.func @transform_5(%arg0: i32) -> (i32, i32) {
    %c0_i32 = arith.constant 0 : i32
    %c0_i32_0 = arith.constant 0 : i32
    %c0_i32_1 = arith.constant 0 : i32
    return %c0_i32, %c0_i32_0 : i32, i32
  }
  func.func @transform_6(%arg0: i32) -> (i32, i32) {
    %c0_i32 = arith.constant 0 : i32
    %c0_i32_0 = arith.constant 0 : i32
    %c0_i32_1 = arith.constant 0 : i32
    return %c0_i32, %c0_i32_0 : i32, i32
  }
  func.func @transform_7(%arg0: i32) -> (i32, i32) {
    %c0_i32 = arith.constant 0 : i32
    %c0_i32_0 = arith.constant 0 : i32
    return %c0_i32, %arg0 : i32, i32
  }
}

</mosaic_0001>

<bundles_post_ra>
// kernel: tpu_custom_call.1
= control target key start
LH: loop header
LB: loop body
LE: loop exit
PB: predicated region body
PF: predicated region fallthrough
CT: control target
= control target key end

     0   :  { %vm138_vm0 = vcmask 1043456   ;;  %v30_v1 = vlaneseq  ;;  %v469_v2 = vmov 0.0   ;;  %vm470_vm1 = vmmov 0   ;;  %s579_s0 = inlined_call_operand.vmem [shape: bf16[8,128], index: 0, kind: input, shape index: {}]   ;;  %s580_s1 = inlined_call_operand.vmem [shape: s32[1,128], index: 1, kind: input, shape index: {}]   ;;  %s581_s2 = inlined_call_operand.vmem [shape: bf16[16,8], index: 2, kind: input, shape index: {}]   ;;  %s582_s3 = inlined_call_operand.vmem [shape: f32[16,16], index: 3, kind: input, shape index: {}]   ;;  %s583_s4 = inlined_call_operand.vmem [shape: f32[16,1], index: 4, kind: input, shape index: {}]   ;;  %s584_s5 = inlined_call_operand.vmem [shape: f32[32,16], index: 5, kind: input, shape index: {}]   ;;  %s585_s6 = inlined_call_operand.vmem [shape: f32[32,1], index: 6, kind: input, shape index: {}]   ;;  %s586_s7 = inlined_call_operand.hbm [shape: bf16[32,128], index: 7, kind: output, shape index: {}]  }
   0x1   :  { %v28_v0 = vld [vmem:[%s579_s0] sm:$0xf]  ;;  %411 = vmatprep.subr.bf16.mxu1 %v469_v2  ;;  %413 = vmatprep.mubr.msk.bf16.mxu1 %vm470_vm1, %v469_v2  ;;  %vm134_vm2 = vcmask 64512   ;;  %vm47_vm3 = vcmask 130048   ;;  %v471_v10 = vmov 0  }
   0x2   :  { %v140_v3 = vsel %vm138_vm0, %v28_v0, 0  ;;  %v360_v4 = vld [vmem:[%s580_s1] ss:$0 sm:$0xff]  ;;  %v31_v6 = vshrl.u32 %v30_v1, 7  ;;  %442 = vset.pattern.permute.xlu0 %v471_v10 }
   0x3   :  { %v444_v5 = vld [vmem:[%s581_s2] sm:$0xff]   ;;  %412 = vmatpush3.bf16.msra.mxu1 %v140_v3 }
   0x4   :  { %v45_v7 = vld [vmem:[%s582_s3] sm:$0xff]  ;;  %v32_v9 = vadd.s32 8, %v31_v6  ;;  %vm37_vm4 = vcmp.eq.s32.totalorder %v31_v6, %v360_v4 }
   0x5   :  { %v183_v8 = vld [vmem:[%s583_s4] sm:$0xff]  ;;  %408 = vmatprep.mubr.msk.f32.mxu0 %vm47_vm3, %v45_v7 }
   0x6   :  { %12 = vsyncpa [#allocation3], 0  ;;  %414 = vmatmul.mubr.msk.bf16.vlgmr.msra.gmra.mrb[0].mxu1 %vm134_vm2, %v444_v5  ;;  %187 = vperm.xlu0 %442, %v183_v8   ;;  %vm38_vm5 = vcmp.eq.s32.totalorder %v32_v9, %v360_v4  ;;  %v184_v11 = vld [vmem:[%s583_s4 + $0x8] sm:$0xff]  ;;  %v472_v12 = vmov 1.0|1.0   ;;  %v205_v14 = vld [vmem:[%s585_s6 + $0x10] sm:$0xff] }
   0x7   :  { %443 = vset.pattern.permute.xlu1 %v471_v10  ;;  %vm427_vm6 = vmpackc.low %vm38_vm5, %vm37_vm4  ;;  %v46_v13 = vld [vmem:[%s582_s3 + $0x8] sm:$0xff]  ;;  %v199_v15 = vld [vmem:[%s584_s5] sm:$0xff]  ;;  %s473_s25 = smov [#allocation2]  }
   0x8   :  { %428 = vmatprep.subr.msk.bf16.mxu0 %vm427_vm6, %v472_v12  ;;  %v203_v16 = vld [vmem:[%s585_s6] sm:$0xff]  ;;  %v204_v17 = vld [vmem:[%s585_s6 + $0x8] sm:$0xff]  ;;  %v206_v18 = vld [vmem:[%s585_s6 + $0x18] sm:$0xff]  ;;  %s349_s26 = sshll.u32 %s473_s25, 4  ;;  %s350_s26 = int_to_ptr.vmem [resolvable:$true] %s349_s26 }
   0x9   :  { %430 = vmatpush3.bf16.msk.msra.mxu0 %vm427_vm6, %v472_v12  ;;  %209 = vperm.xlu1 %443, %v203_v16   ;;  %v200_v34 = vld [vmem:[%s584_s5 + $0x8] sm:$0xff]  ;;  %v201_v35 = vld [vmem:[%s584_s5 + $0x10] sm:$0xff]  ;;  %v202_v36 = vld [vmem:[%s584_s5 + $0x18] sm:$0xff]  ;;  %s445_s5 = scalar_lea.vmem %s350_s26, 256  ;;  %p450_p1 = scmp.lt.s32.totalorder %s350_s26, %s350_s26 }
   0xa   :  { %192 = vperm.xlu0 %442, %v184_v11   ;;  %p446_p0 = scmp.ne.s32.totalorder %s350_s26, %s445_s5  ;;  %p451_p2 = scmp.lt.s32.totalorder %s445_s5, %s445_s5 }
   0xc   :  { %409 = vmatmul.mubr.msk.f32.vlgmr.msra.gmra.mrb[0].mxu0 %vm47_vm3, %v46_v13  ;;  %p452_p3 = por %p451_p2, %p450_p1 }
   0xd   :  { %421 = vmatprep.mubr.msk.f32.mxu0 %vm47_vm3, %v199_v15  ;;  %214 = vperm.xlu1 %443, %v204_v17  }
   0xe   :  { %219 = vperm.xlu0 %442, %v205_v14   ;;  %p453_p4 = pnand %p452_p3, %p446_p0 }
  0x11   :  { %224 = vperm.xlu1 %443, %v206_v18  }
  0x85   :  { %v188_v22 = vpop.permute.xlu0 %187 }
  0x88   :  { %v210_v37 = vpop.permute.xlu1 %209 }
  0x89   :  { %v193_v27 = vpop.permute.xlu0 %192 }
  0x8c   :  { %v215_v38 = vpop.permute.xlu1 %214 }
  0x8d   :  { %v220_v46 = vpop.permute.xlu0 %219 }
  0x90   :  { %v225_v43 = vpop.permute.xlu1 %224 }
  0xd9   :  { %v176_v19 = vpop.f32.mrb[0].mxu1 }
  0xda   :  { %v415_v20 = vpop.f32.mrb[1].mxu1 }
  0xdb   :  { %v179_v21 = vpop.f32.mrb[2].mxu1 }
  0xdc   :  { %v416_v23 = vpop.f32.mrb[3].mxu1 }
  0xdf   :  { %v410_v24 = vpop.f32.mrb[0].mxu0 }
  0xe0   :  { %v180_v25 = vadd.f32 %v410_v24, %v179_v21  ;;  %v120_v26 = vpop.f32.mrb[1].mxu0 }
  0xe1   :  { %v177_v28 = vadd.f32 %v176_v19, %v120_v26 }
  0xe2   :  { %v196_v29 = vadd.f32 %v193_v27, %v180_v25 }
  0xe3   :  { %v195_v30 = vadd.f32 %v188_v22, %v177_v28 }
  0xe4   :  { %v198_v31 = vmax.f32 %v196_v29, 0.0 }
  0xe5   :  { %v197_v32 = vmax.f32 %v195_v30, 0.0 }
  0xe7   :  { %v431_v33 = vpack.c.bf16 %v198_v31, %v197_v32 }
  0xe9   :  { %432 = vmatprep.subr.bf16.mxu0 %v431_v33 }
  0xea   :  { %434 = vmatpush3.bf16.msra.mxu0 %v431_v33 }
  0xed   :  { %422 = vmatmul.mubr.msk.f32.vlgmr.msra.gmra.mrb[2].mxu0 %vm47_vm3, %v200_v34 }
  0xee   :  { %424 = vmatprep.mubr.msk.f32.mxu0 %vm47_vm3, %v201_v35 }
  0xf1   :  { %425 = vmatmul.mubr.msk.f32.gmra.mrb[4].mxu0 %vm47_vm3, %v202_v36 }
 0x1c0   :  { %v423_v39 = vpop.f32.mrb[2].mxu0 }
 0x1c1   :  { %v311_v40 = vadd.f32 %v423_v39, %v215_v38  ;;  %v305_v41 = vpop.f32.mrb[3].mxu0 }
 0x1c2   :  { %v306_v42 = vadd.f32 %v305_v41, %v210_v37 }
 0x1c4   :  { %v384_v44 = vpack.c.bf16 %v311_v40, %v306_v42  ;;  %v426_v45 = vpop.f32.mrb[4].mxu0 }
 0x1c5   :  { %v321_v47 = vadd.f32 %v426_v45, %v225_v43  ;;  %v315_v48 = vpop.f32.mrb[5].mxu0 }
 0x1c6   :  { %385 = vst [vmem:[#allocation2] sm:$0xff] %v384_v44   ;;  %v316_v49 = vadd.f32 %v315_v48, %v220_v46 }
 0x1c8   :  { %v389_v50 = vpack.c.bf16 %v321_v47, %v316_v49 }
 0x1ca   :  { %391 = vst [vmem:[#allocation2 + $0x8] sm:$0xff] %v389_v50  }
 0x1cb   :  { %456 = shalt.err (!%p453_p4)
}
 0x1cc   :  { %s457_s29 = scalar_lea.hbm %s586_s7, 256 }
 0x1cd   :  { %p458_p5 = scmp.ne.s32.totalorder %s586_s7, %s457_s29  ;;  %p461_p6 = scmp.lt.u32.totalorder %s457_s29, %s586_s7 }
 0x1cf   :  { %p463_p7 = pnand %p461_p6, %p458_p5 }
 0x1d1   :  { %466 = shalt.err (!%p463_p7)
}
 0x1d2   :  { %s474_s1 = smov 64   ;;  %s475_s2 = smov 4  }
 0x1d3   :  { %355 = dma.vmem_to_hbm [thread:$0]  %s350_s26, 256, %s586_s7, [#allocation3], %s474_s1, %s474_s1, %s475_s2  }
 0x1d4   :  { %467 = dma.done.wait [#allocation3], 256  }
 0x1d5   :  { %468 = vsyncadd [#allocation3], 4294967040 }
 0x1d6   :  { %359 = vsyncpa [#allocation3], 1 }

</bundles_post_ra>
